<compile_context>
chip_gen: v7x
topology: tpu7x:2x2x1
jax: 0.10.0
libtpu: 0.0.40
codegen_flags: <defaults>
</compile_context>

<pallas_src>
import functools

import jax
import jax.numpy as jnp
from jax.experimental import pallas as pl
from jax.experimental.pallas import tpu as pltpu


def _silu(v):
    return v * (1.0 / (1.0 + jnp.exp(-v)))


def _layernorm(v, g, b, eps=1e-5):
    mu = jnp.mean(v, axis=-1, keepdims=True)
    var = jnp.mean((v - mu) ** 2, axis=-1, keepdims=True)
    return (v - mu) * jax.lax.rsqrt(var + eps) * g + b


# ---------------------------------------------------------------------------
# Fused kernel: masked token-sum streaming reduction + MLP head epilogue.
# ---------------------------------------------------------------------------
def fused_kernel(nt_ref,                          # (B,) int32, scalar prefetch (SMEM)
                 x_ref,                           # (1, block_tp, L) token tile
                 gid_ref,                         # (1, L) int32 lane-group ids (resident)
                 w1_ref, b1_ref, g1_ref, be1_ref,
                 w2_ref, b2_ref, g2_ref, be2_ref,
                 w3t_ref, b3_ref,                 # head params (resident)
                 out_ref,                         # (1, 1, 1) f32
                 acc_ref,                         # (1, L) f32 scratch accumulator
                 *, block_tp, G):
    b = pl.program_id(0)
    t = pl.program_id(1)

    @pl.when(t == 0)
    def _init():
        acc_ref[...] = jnp.zeros_like(acc_ref)

    nt = nt_ref[b]                                # int32 scalar
    # Fold the grid offset into a scalar on the scalar unit.
    nt_rel = nt - t * (block_tp * G)

    L = acc_ref.shape[-1]
    x = x_ref[0].astype(jnp.float32)              # (block_tp, L)

    # Original token id of packed row p / lane l is (t*block_tp + p)*G + gid[l].
    # (token < num_tokens)  <=>  p < ceil((nt_rel - gid)/G): a per-LANE threshold,
    # i.e. one vreg of integer work per grid step instead of per element.
    p_idx = jax.lax.broadcasted_iota(jnp.int32, (block_tp, L), 0)
    if G > 1:
        shift = G.bit_length() - 1                # G is a power of two
        thr = (nt_rel - gid_ref[...] + (G - 1)) >> shift     # (1, L) int32
        mask = p_idx < thr
    else:
        mask = p_idx < nt_rel
    # Select (not multiply) so garbage/NaN rows of a ragged last tile are zeroed.
    xw = jnp.where(mask, x, 0.0)
    acc_ref[...] += jnp.sum(xw, axis=0, keepdims=True)

    # TODO(synk): when G == 1 an MXU contraction (row-mask @ x) could replace the VPU
    # select+reduce on v7x; kept on the VPU here for simplicity/robustness.

    @pl.when(t == pl.num_programs(1) - 1)
    def _epilogue():
        inv_n = 1.0 / nt.astype(jnp.float32)
        # The fold of the G lane groups back to D features is absorbed into w1
        # (tiled to (G*D, D//4) in the wrapper), so avg stays lane-packed.
        avg = acc_ref[...] * inv_n                # (1, L)
        h = jnp.dot(avg, w1_ref[...], preferred_element_type=jnp.float32) + b1_ref[...]
        h = _layernorm(_silu(h), g1_ref[...], be1_ref[...])
        h = jnp.dot(h, w2_ref[...], preferred_element_type=jnp.float32) + b2_ref[...]
        h = _layernorm(_silu(h), g2_ref[...], be2_ref[...])
        h = jnp.sum(h * w3t_ref[...], axis=-1, keepdims=True) + b3_ref[...]
        out_ref[0] = h                            # (1, 1)


# ---------------------------------------------------------------------------
# Wrapper
# ---------------------------------------------------------------------------
def _sublane_multiple(dtype):
    itemsize = jnp.dtype(dtype).itemsize
    return max(8, 32 // itemsize)                 # 8 f32, 16 bf16, 32 int8


def _default_vmem_limit():
    try:
        cap = int(pltpu.get_tpu_info().vmem_capacity_bytes)
    except Exception:
        cap = 64 * 1024 * 1024
    # ~75% of physical: ~48 MiB on v7x (64 MiB phys), ~96 MiB on v5e/v6e (128 MiB phys).
    return max(16 * 1024 * 1024, min((cap * 3) // 4, 96 * 1024 * 1024))


def e2e_duration_forward(x, num_tokens, ref_length, params, *,
                         max_block_rows=None, vmem_limit_bytes=None):
    """E2EDuration.forward with output_exp_scale=True (ExpScale head, eval mode)."""
    del ref_length                                 # backbone treated as identity
    B, T, D = x.shape
    nt_i32 = jnp.asarray(num_tokens).reshape(B).astype(jnp.int32)
    itemsize = jnp.dtype(x.dtype).itemsize

    if vmem_limit_bytes is None:
        vmem_limit_bytes = _default_vmem_limit()

    # Lane-dense packing WITHOUT any jnp.pad copy: only fold G tokens into the lane
    # axis when G divides T exactly (G stays a power of two).
    G = 128 // D if (D <= 128 and 128 % D == 0) else 1
    while G > 1 and T % G != 0:
        G //= 2
    assert G & (G - 1) == 0
    L = G * D
    T_p = T // G
    x_packed = x.reshape(B, T_p, L)                # free (contiguous) reshape

    # Token-tile size from the VMEM budget: 2 double-buffered x tiles + ~4 f32/i32
    # tile-sized compute temporaries + 8 MiB headroom for params/acc/compiler scratch.
    sub = _sublane_multiple(x.dtype)
    row_bytes = 2 * L * itemsize + 4 * L * 4
    cap_rows = max(sub, ((vmem_limit_bytes - (8 << 20)) // row_bytes) // sub * sub)
    if max_block_rows is not None:
        cap_rows = min(cap_rows, max(sub, (max_block_rows // sub) * sub))
    if cap_rows >= T_p:
        block_tp = T_p                             # single step, full-extent block
    else:
        block_tp = cap_rows                        # multiple of sub; ragged tail masked
    n_t = pl.cdiv(T_p, block_tp)

    # Resident constants (DMA'd once: their block index never changes).
    gid = jnp.repeat(jnp.arange(G, dtype=jnp.int32), D).reshape(1, L)
    f32 = functools.partial(jnp.asarray, dtype=jnp.float32)
    w1 = f32(params["w1"])
    w1p = jnp.tile(w1, (G, 1)) if G > 1 else w1    # (L, D//4): absorbs the G-fold
    w3t = f32(params["w3"]).T                      # (1, D//16)
    head = (gid, w1p,
            f32(params["b1"]), f32(params["g1"]), f32(params["be1"]),
            f32(params["w2"]), f32(params["b2"]), f32(params["g2"]), f32(params["be2"]),
            w3t, f32(params["b3"]))

    def resident_spec(a):
        nd = a.ndim
        return pl.BlockSpec(a.shape, lambda b_, t_, nt_, _nd=nd: (0,) * _nd)

    d4 = w1p.shape[1]
    d16 = w3t.shape[1]
    cost = pl.CostEstimate(
        flops=2 * B * T_p * L + 2 * B * (L * d4 + d4 * d16 + d16),
        transcendentals=2 * B * (d4 + d16),
        bytes_accessed=B * T_p * L * itemsize + sum(a.size * 4 for a in head) + B * 8)

    out = pl.pallas_call(
        functools.partial(fused_kernel, block_tp=block_tp, G=G),
        out_shape=jax.ShapeDtypeStruct((B, 1, 1), jnp.float32),
        grid_spec=pltpu.PrefetchScalarGridSpec(
            num_scalar_prefetch=1,                 # num_tokens -> SMEM
            grid=(B, n_t),
            in_specs=[pl.BlockSpec((1, block_tp, L), lambda b_, t_, nt_: (b_, t_, 0))]
                     + [resident_spec(a) for a in head],
            out_specs=pl.BlockSpec((1, 1, 1), lambda b_, t_, nt_: (b_, 0, 0)),
            scratch_shapes=[pltpu.VMEM((1, L), jnp.float32)],
        ),
        compiler_params=pltpu.CompilerParams(
            dimension_semantics=("parallel", "arbitrary"),
            vmem_limit_bytes=int(vmem_limit_bytes)),
        cost_estimate=cost,
    )(nt_i32, x_packed, *head)

    # TODO(synk): when B == 1 the token axis could be split across the two v7x
    # TensorCores (extra "parallel" grid axis of partial sums); not done here.
    return out[:, 0, 0]                            # .squeeze(-1)


# ---------------------------------------------------------------------------
# Pure-JAX reference + test harness
# ---------------------------------------------------------------------------
def _reference(x, num_tokens, params):
    B, T, D = x.shape
    mask = (jnp.arange(T)[None, :] < num_tokens[:, None]).astype(jnp.float32)
    token_out = x.astype(jnp.float32) * mask[:, :, None]
    avg = token_out.sum(1) / num_tokens[:, None].astype(jnp.float32)
    h = avg @ params["w1"] + params["b1"]
    h = _layernorm(_silu(h), params["g1"], params["be1"])
    h = h @ params["w2"] + params["b2"]
    h = _layernorm(_silu(h), params["g2"], params["be2"])
    h = h @ params["w3"] + params["b3"]
    return h[:, 0]


def make_params(key, dim):
    d4, d16 = dim // 4, dim // 16
    ks = jax.random.split(key, 6)
    scale = 0.1
    return dict(
        w1=scale * jax.random.normal(ks[0], (dim, d4), jnp.float32),
        b1=scale * jax.random.normal(ks[1], (1, d4), jnp.float32),
        g1=jnp.ones((1, d4), jnp.float32),
        be1=jnp.zeros((1, d4), jnp.float32),
        w2=scale * jax.random.normal(ks[2], (d4, d16), jnp.float32),
        b2=scale * jax.random.normal(ks[3], (1, d16), jnp.float32),
        g2=jnp.ones((1, d16), jnp.float32),
        be2=jnp.zeros((1, d16), jnp.float32),
        w3=scale * jax.random.normal(ks[4], (d16, 1), jnp.float32),
        b3=scale * jax.random.normal(ks[5], (1, 1), jnp.float32),
    )


if __name__ == "__main__":
    B, T, D = 2, 64, 32
    key = jax.random.PRNGKey(0)
    kx, knt, kref, kp = jax.random.split(key, 4)

    x = jax.random.normal(kx, (B, T, D), jnp.float32)
    num_tokens = jax.random.randint(knt, (B,), 1, T + 1, jnp.int32)
    ref_length = jax.random.randint(kref, (B,), 1, T + 1, jnp.int32)
    params = make_params(kp, D)

    ref = _reference(x, num_tokens, params)

    # 1) Default: single large tile along the packed-token axis (G = 4, L = 128).
    out = jax.block_until_ready(
        e2e_duration_forward(x, num_tokens, ref_length, params))
    assert out.shape == (B,)
    assert jnp.allclose(out, ref, atol=1e-4, rtol=1e-4), (out, ref)

    # 2) Force multiple grid steps (accumulator + resident-weight-reuse path).
    out2 = jax.block_until_ready(
        e2e_duration_forward(x, num_tokens, ref_length, params, max_block_rows=8))
    assert jnp.allclose(out2, ref, atol=1e-4, rtol=1e-4), (out2, ref)

    # 3) Ragged case: T not divisible by any G > 1 nor by block_tp (OOB tail masked
    #    in-kernel, no jnp.pad anywhere).
    T3 = 61
    x3 = jax.random.normal(kx, (B, T3, D), jnp.float32)
    nt3 = jax.random.randint(knt, (B,), 1, T3 + 1, jnp.int32)
    ref3 = _reference(x3, nt3, params)
    out3 = jax.block_until_ready(
        e2e_duration_forward(x3, nt3, ref_length, params, max_block_rows=16))
    assert jnp.allclose(out3, ref3, atol=1e-4, rtol=1e-4), (out3, ref3)

    print("KERNEL_OK")
</pallas_src>

<mosaic_0001>
module attributes {stable_mosaic.version = 11 : i64} {
  func.func @fused_kernel(%arg0: i32, %arg1: i32, %arg2: memref<2xi32, #tpu.memory_space<smem>>, %arg3: memref<1x16x128xf32, #tpu.memory_space<vmem>>, %arg4: memref<1x128xi32, #tpu.memory_space<vmem>>, %arg5: memref<128x8xf32, #tpu.memory_space<vmem>>, %arg6: memref<1x8xf32, #tpu.memory_space<vmem>>, %arg7: memref<1x8xf32, #tpu.memory_space<vmem>>, %arg8: memref<1x8xf32, #tpu.memory_space<vmem>>, %arg9: memref<8x2xf32, #tpu.memory_space<vmem>>, %arg10: memref<1x2xf32, #tpu.memory_space<vmem>>, %arg11: memref<1x2xf32, #tpu.memory_space<vmem>>, %arg12: memref<1x2xf32, #tpu.memory_space<vmem>>, %arg13: memref<1x2xf32, #tpu.memory_space<vmem>>, %arg14: memref<1x1xf32, #tpu.memory_space<vmem>>, %arg15: memref<1x1x1xf32, #tpu.memory_space<vmem>>, %arg16: memref<1x128xf32, #tpu.memory_space<vmem>>) attributes {dimension_semantics = [#tpu.dimension_semantics<parallel>, #tpu.dimension_semantics<arbitrary>], iteration_bounds = array<i64: 2, 1>, scalar_prefetch = 1 : i64, scratch_operands = 1 : i64, tpu.core_type = #tpu.core_type<tc>, window_params = [{transform_indices = @transform_0, window_bounds = array<i64: 1, 16, 128>}, {pipeline_mode = #tpu.pipeline_mode<synchronous>, transform_indices = @transform_1, window_bounds = array<i64: 1, 128>}, {pipeline_mode = #tpu.pipeline_mode<synchronous>, transform_indices = @transform_2, window_bounds = array<i64: 128, 8>}, {pipeline_mode = #tpu.pipeline_mode<synchronous>, transform_indices = @transform_3, window_bounds = array<i64: 1, 8>}, {pipeline_mode = #tpu.pipeline_mode<synchronous>, transform_indices = @transform_4, window_bounds = array<i64: 1, 8>}, {pipeline_mode = #tpu.pipeline_mode<synchronous>, transform_indices = @transform_5, window_bounds = array<i64: 1, 8>}, {pipeline_mode = #tpu.pipeline_mode<synchronous>, transform_indices = @transform_6, window_bounds = array<i64: 8, 2>}, {pipeline_mode = #tpu.pipeline_mode<synchronous>, transform_indices = @transform_7, window_bounds = array<i64: 1, 2>}, {pipeline_mode = #tpu.pipeline_mode<synchronous>, transform_indices = @transform_8, window_bounds = array<i64: 1, 2>}, {pipeline_mode = #tpu.pipeline_mode<synchronous>, transform_indices = @transform_9, window_bounds = array<i64: 1, 2>}, {pipeline_mode = #tpu.pipeline_mode<synchronous>, transform_indices = @transform_10, window_bounds = array<i64: 1, 2>}, {pipeline_mode = #tpu.pipeline_mode<synchronous>, transform_indices = @transform_11, window_bounds = array<i64: 1, 1>}, {transform_indices = @transform_12, window_bounds = array<i64: 1, 1, 1>}]} {
    %c0_i32 = arith.constant 0 : i32
    %0 = arith.cmpi eq, %arg1, %c0_i32 : i32
    %1 = arith.extui %0 : i1 to i32
    %c0_i32_0 = arith.constant 0 : i32
    %2 = arith.cmpi ne, %1, %c0_i32_0 : i32
    scf.if %2 {
      %cst_12 = arith.constant 0.000000e+00 : f32
      %29 = vector.broadcast %cst_12 : f32 to vector<1x128xf32>
      %c0_13 = arith.constant 0 : index
      %c0_14 = arith.constant 0 : index
      %30 = vector.load %arg16[%c0_13, %c0_14] : memref<1x128xf32, #tpu.memory_space<vmem>>, vector<1x128xf32>
      tpu.vector_store %arg16[%c0_13, %c0_14], %29 {strides = array<i32>} : memref<1x128xf32, #tpu.memory_space<vmem>>, vector<1x128xf32>,
    } else {
    }
    %3 = arith.index_cast %arg0 : i32 to index
    %4 = memref.load %arg2[%3] : memref<2xi32, #tpu.memory_space<smem>>
    %c64_i32 = arith.constant 64 : i32
    %5 = arith.muli %arg1, %c64_i32 : i32
    %6 = arith.subi %4, %5 : i32
    %c0 = arith.constant 0 : index
    %c0_1 = arith.constant 0 : index
    %c0_2 = arith.constant 0 : index
    %7 = vector.load %arg3[%c0, %c0_1, %c0_2] : memref<1x16x128xf32, #tpu.memory_space<vmem>>, vector<1x16x128xf32>
    %8 = vector.shape_cast %7 : vector<1x16x128xf32> to vector<16x128xf32>
    %9 = tpu.iota {dimensions = array<i32: 0>} : vector<16x128xi32>
    %c0_3 = arith.constant 0 : index
    %c0_4 = arith.constant 0 : index
    %10 = vector.load %arg4[%c0_3, %c0_4] : memref<1x128xi32, #tpu.memory_space<vmem>>, vector<1x128xi32>
    %11 = vector.broadcast %6 : i32 to vector<1x128xi32>
    %12 = arith.subi %11, %10 : vector<1x128xi32>
    %c3_i32 = arith.constant 3 : i32
    %13 = vector.broadcast %c3_i32 : i32 to vector<1x128xi32>
    %14 = arith.addi %12, %13 : vector<1x128xi32>
    %c2_i32 = arith.constant 2 : i32
    %15 = vector.broadcast %c2_i32 : i32 to vector<1x128xi32>
    %16 = arith.shrsi %14, %15 : vector<1x128xi32>
    %17 = vector.broadcast %16 : vector<1x128xi32> to vector<16x128xi32>
    %18 = arith.cmpi slt, %9, %17 : vector<16x128xi32>
    %cst = arith.constant 0.000000e+00 : f32
    %19 = vector.broadcast %cst : f32 to vector<16x128xf32>
    %20 = arith.select %18, %8, %19 : vector<16x128xi1>, vector<16x128xf32>
    %c0_5 = arith.constant 0 : index
    %c0_6 = arith.constant 0 : index
    %21 = vector.load %arg16[%c0_5, %c0_6] : memref<1x128xf32, #tpu.memory_space<vmem>>, vector<1x128xf32>
    %cst_7 = arith.constant dense<0.000000e+00> : vector<128xf32>
    %22 = vector.multi_reduction <add>, %20, %cst_7 [0] : vector<16x128xf32> to vector<128xf32>
    %23 = vector.shape_cast %22 : vector<128xf32> to vector<1x128xf32>
    %24 = arith.addf %21, %23 : vector<1x128xf32>
    %c0_8 = arith.constant 0 : index
    %c0_9 = arith.constant 0 : index
    %25 = vector.load %arg16[%c0_8, %c0_9] : memref<1x128xf32, #tpu.memory_space<vmem>>, vector<1x128xf32>
    tpu.vector_store %arg16[%c0_8, %c0_9], %24 {strides = array<i32>} : memref<1x128xf32, #tpu.memory_space<vmem>>, vector<1x128xf32>,
    %c0_i32_10 = arith.constant 0 : i32
    %26 = arith.cmpi eq, %arg1, %c0_i32_10 : i32
    %27 = arith.extui %26 : i1 to i32
    %c0_i32_11 = arith.constant 0 : i32
    %28 = arith.cmpi ne, %27, %c0_i32_11 : i32
    scf.if %28 {
      %29 = arith.sitofp %4 : i32 to f32
      %cst_12 = arith.constant 1.000000e+00 : f32
      %30 = arith.divf %cst_12, %29 : f32
      %c0_13 = arith.constant 0 : index
      %c0_14 = arith.constant 0 : index
      %31 = vector.load %arg16[%c0_13, %c0_14] : memref<1x128xf32, #tpu.memory_space<vmem>>, vector<1x128xf32>
      %32 = vector.broadcast %30 : f32 to vector<1x128xf32>
      %33 = arith.mulf %31, %32 : vector<1x128xf32>
      %c0_15 = arith.constant 0 : index
      %c0_16 = arith.constant 0 : index
      %34 = vector.load %arg5[%c0_15, %c0_16] : memref<128x8xf32, #tpu.memory_space<vmem>>, vector<128x8xf32>
      %cst_17 = arith.constant dense<0.000000e+00> : vector<1x8xf32>
      %35 = tpu.matmul %33, %34, %cst_17 {dimension_numbers = #tpu.dot_dimension_numbers<[1], [0], [0], [1], [0, 0, 1, 1], [], []>} : vector<1x128xf32>, vector<128x8xf32>, vector<1x8xf32> -> vector<1x8xf32>
      %c0_18 = arith.constant 0 : index
      %c0_19 = arith.constant 0 : index
      %36 = vector.load %arg6[%c0_18, %c0_19] : memref<1x8xf32, #tpu.memory_space<vmem>>, vector<1x8xf32>
      %37 = arith.addf %35, %36 : vector<1x8xf32>
      %cst_20 = arith.constant 0.000000e+00 : f32
      %38 = vector.broadcast %cst_20 : f32 to vector<1x8xf32>
      %39 = arith.subf %38, %37 : vector<1x8xf32>
      %40 = math.exp %39 : vector<1x8xf32>
      %cst_21 = arith.constant 1.000000e+00 : f32
      %41 = vector.broadcast %cst_21 : f32 to vector<1x8xf32>
      %42 = arith.addf %41, %40 : vector<1x8xf32>
      %cst_22 = arith.constant 1.000000e+00 : f32
      %43 = vector.broadcast %cst_22 : f32 to vector<1x8xf32>
      %44 = arith.divf %43, %42 : vector<1x8xf32>
      %45 = arith.mulf %37, %44 : vector<1x8xf32>
      %c0_23 = arith.constant 0 : index
      %c0_24 = arith.constant 0 : index
      %46 = vector.load %arg7[%c0_23, %c0_24] : memref<1x8xf32, #tpu.memory_space<vmem>>, vector<1x8xf32>
      %c0_25 = arith.constant 0 : index
      %c0_26 = arith.constant 0 : index
      %47 = vector.load %arg8[%c0_25, %c0_26] : memref<1x8xf32, #tpu.memory_space<vmem>>, vector<1x8xf32>
      %cst_27 = arith.constant dense<0.000000e+00> : vector<1xf32>
      %48 = vector.multi_reduction <add>, %45, %cst_27 [1] : vector<1x8xf32> to vector<1xf32>
      %49 = vector.shape_cast %48 : vector<1xf32> to vector<1x1xf32>
      %cst_28 = arith.constant 8.000000e+00 : f32
      %50 = vector.broadcast %cst_28 : f32 to vector<1x1xf32>
      %51 = arith.divf %49, %50 : vector<1x1xf32>
      %52 = vector.broadcast %51 : vector<1x1xf32> to vector<1x8xf32>
      %53 = arith.subf %45, %52 : vector<1x8xf32>
      %54 = arith.mulf %53, %53 : vector<1x8xf32>
      %cst_29 = arith.constant dense<0.000000e+00> : vector<1xf32>
      %55 = vector.multi_reduction <add>, %54, %cst_29 [1] : vector<1x8xf32> to vector<1xf32>
      %56 = vector.shape_cast %55 : vector<1xf32> to vector<1x1xf32>
      %cst_30 = arith.constant 8.000000e+00 : f32
      %57 = vector.broadcast %cst_30 : f32 to vector<1x1xf32>
      %58 = arith.divf %56, %57 : vector<1x1xf32>
      %59 = vector.broadcast %51 : vector<1x1xf32> to vector<1x8xf32>
      %60 = arith.subf %45, %59 : vector<1x8xf32>
      %cst_31 = arith.constant 9.99999974E-6 : f32
      %61 = vector.broadcast %cst_31 : f32 to vector<1x1xf32>
      %62 = arith.addf %58, %61 : vector<1x1xf32>
      %63 = math.rsqrt %62 : vector<1x1xf32>
      %64 = vector.broadcast %63 : vector<1x1xf32> to vector<1x8xf32>
      %65 = arith.mulf %60, %64 : vector<1x8xf32>
      %66 = arith.mulf %65, %46 : vector<1x8xf32>
      %67 = arith.addf %66, %47 : vector<1x8xf32>
      %c0_32 = arith.constant 0 : index
      %c0_33 = arith.constant 0 : index
      %68 = vector.load %arg9[%c0_32, %c0_33] : memref<8x2xf32, #tpu.memory_space<vmem>>, vector<8x2xf32>
      %cst_34 = arith.constant dense<0.000000e+00> : vector<1x2xf32>
      %69 = tpu.matmul %67, %68, %cst_34 {dimension_numbers = #tpu.dot_dimension_numbers<[1], [0], [0], [1], [0, 0, 1, 1], [], []>} : vector<1x8xf32>, vector<8x2xf32>, vector<1x2xf32> -> vector<1x2xf32>
      %c0_35 = arith.constant 0 : index
      %c0_36 = arith.constant 0 : index
      %70 = vector.load %arg10[%c0_35, %c0_36] : memref<1x2xf32, #tpu.memory_space<vmem>>, vector<1x2xf32>
      %71 = arith.addf %69, %70 : vector<1x2xf32>
      %cst_37 = arith.constant 0.000000e+00 : f32
      %72 = vector.broadcast %cst_37 : f32 to vector<1x2xf32>
      %73 = arith.subf %72, %71 : vector<1x2xf32>
      %74 = math.exp %73 : vector<1x2xf32>
      %cst_38 = arith.constant 1.000000e+00 : f32
      %75 = vector.broadcast %cst_38 : f32 to vector<1x2xf32>
      %76 = arith.addf %75, %74 : vector<1x2xf32>
      %cst_39 = arith.constant 1.000000e+00 : f32
      %77 = vector.broadcast %cst_39 : f32 to vector<1x2xf32>
      %78 = arith.divf %77, %76 : vector<1x2xf32>
      %79 = arith.mulf %71, %78 : vector<1x2xf32>
      %c0_40 = arith.constant 0 : index
      %c0_41 = arith.constant 0 : index
      %80 = vector.load %arg11[%c0_40, %c0_41] : memref<1x2xf32, #tpu.memory_space<vmem>>, vector<1x2xf32>
      %c0_42 = arith.constant 0 : index
      %c0_43 = arith.constant 0 : index
      %81 = vector.load %arg12[%c0_42, %c0_43] : memref<1x2xf32, #tpu.memory_space<vmem>>, vector<1x2xf32>
      %cst_44 = arith.constant dense<0.000000e+00> : vector<1xf32>
      %82 = vector.multi_reduction <add>, %79, %cst_44 [1] : vector<1x2xf32> to vector<1xf32>
      %83 = vector.shape_cast %82 : vector<1xf32> to vector<1x1xf32>
      %cst_45 = arith.constant 2.000000e+00 : f32
      %84 = vector.broadcast %cst_45 : f32 to vector<1x1xf32>
      %85 = arith.divf %83, %84 : vector<1x1xf32>
      %86 = vector.broadcast %85 : vector<1x1xf32> to vector<1x2xf32>
      %87 = arith.subf %79, %86 : vector<1x2xf32>
      %88 = arith.mulf %87, %87 : vector<1x2xf32>
      %cst_46 = arith.constant dense<0.000000e+00> : vector<1xf32>
      %89 = vector.multi_reduction <add>, %88, %cst_46 [1] : vector<1x2xf32> to vector<1xf32>
      %90 = vector.shape_cast %89 : vector<1xf32> to vector<1x1xf32>
      %cst_47 = arith.constant 2.000000e+00 : f32
      %91 = vector.broadcast %cst_47 : f32 to vector<1x1xf32>
      %92 = arith.divf %90, %91 : vector<1x1xf32>
      %93 = vector.broadcast %85 : vector<1x1xf32> to vector<1x2xf32>
      %94 = arith.subf %79, %93 : vector<1x2xf32>
      %cst_48 = arith.constant 9.99999974E-6 : f32
      %95 = vector.broadcast %cst_48 : f32 to vector<1x1xf32>
      %96 = arith.addf %92, %95 : vector<1x1xf32>
      %97 = math.rsqrt %96 : vector<1x1xf32>
      %98 = vector.broadcast %97 : vector<1x1xf32> to vector<1x2xf32>
      %99 = arith.mulf %94, %98 : vector<1x2xf32>
      %100 = arith.mulf %99, %80 : vector<1x2xf32>
      %101 = arith.addf %100, %81 : vector<1x2xf32>
      %c0_49 = arith.constant 0 : index
      %c0_50 = arith.constant 0 : index
      %102 = vector.load %arg13[%c0_49, %c0_50] : memref<1x2xf32, #tpu.memory_space<vmem>>, vector<1x2xf32>
      %103 = arith.mulf %101, %102 : vector<1x2xf32>
      %cst_51 = arith.constant dense<0.000000e+00> : vector<1xf32>
      %104 = vector.multi_reduction <add>, %103, %cst_51 [1] : vector<1x2xf32> to vector<1xf32>
      %105 = vector.shape_cast %104 : vector<1xf32> to vector<1x1xf32>
      %c0_52 = arith.constant 0 : index
      %c0_53 = arith.constant 0 : index
      %106 = vector.load %arg14[%c0_52, %c0_53] : memref<1x1xf32, #tpu.memory_space<vmem>>, vector<1x1xf32>
      %107 = arith.addf %105, %106 : vector<1x1xf32>
      %c0_54 = arith.constant 0 : index
      %c0_55 = arith.constant 0 : index
      %c0_56 = arith.constant 0 : index
      %108 = vector.load %arg15[%c0_54, %c0_55, %c0_56] : memref<1x1x1xf32, #tpu.memory_space<vmem>>, vector<1x1x1xf32>
      %109 = vector.shape_cast %108 : vector<1x1x1xf32> to vector<1x1xf32>
      %110 = vector.shape_cast %107 : vector<1x1xf32> to vector<1x1x1xf32>
      tpu.vector_store %arg15[%c0_54, %c0_55, %c0_56], %110 {strides = array<i32>} : memref<1x1x1xf32, #tpu.memory_space<vmem>>, vector<1x1x1xf32>,
    } else {
    }
    return
  }
  func.func @transform_0(%arg0: i32, %arg1: i32, %arg2: memref<2xi32, #tpu.memory_space<smem>>) -> (i32, i32, i32) {
    %c0_i32 = arith.constant 0 : i32
    %c0_i32_0 = arith.constant 0 : i32
    return %arg0, %arg1, %c0_i32 : i32, i32, i32
  }
  func.func @transform_1(%arg0: i32, %arg1: i32, %arg2: memref<2xi32, #tpu.memory_space<smem>>) -> (i32, i32) {
    %c0_i32 = arith.constant 0 : i32
    %c0_i32_0 = arith.constant 0 : i32
    %c0_i32_1 = arith.constant 0 : i32
    return %c0_i32, %c0_i32_0 : i32, i32
  }
  func.func @transform_2(%arg0: i32, %arg1: i32, %arg2: memref<2xi32, #tpu.memory_space<smem>>) -> (i32, i32) {
    %c0_i32 = arith.constant 0 : i32
    %c0_i32_0 = arith.constant 0 : i32
    %c0_i32_1 = arith.constant 0 : i32
    return %c0_i32, %c0_i32_0 : i32, i32
  }
  func.func @transform_3(%arg0: i32, %arg1: i32, %arg2: memref<2xi32, #tpu.memory_space<smem>>) -> (i32, i32) {
    %c0_i32 = arith.constant 0 : i32
    %c0_i32_0 = arith.constant 0 : i32
    %c0_i32_1 = arith.constant 0 : i32
    return %c0_i32, %c0_i32_0 : i32, i32
  }
  func.func @transform_4(%arg0: i32, %arg1: i32, %arg2: memref<2xi32, #tpu.memory_space<smem>>) -> (i32, i32) {
    %c0_i32 = arith.constant 0 : i32
    %c0_i32_0 = arith.constant 0 : i32
    %c0_i32_1 = arith.constant 0 : i32
    return %c0_i32, %c0_i32_0 : i32, i32
  }
  func.func @transform_5(%arg0: i32, %arg1: i32, %arg2: memref<2xi32, #tpu.memory_space<smem>>) -> (i32, i32) {
    %c0_i32 = arith.constant 0 : i32
    %c0_i32_0 = arith.constant 0 : i32
    %c0_i32_1 = arith.constant 0 : i32
    return %c0_i32, %c0_i32_0 : i32, i32
  }
  func.func @transform_6(%arg0: i32, %arg1: i32, %arg2: memref<2xi32, #tpu.memory_space<smem>>) -> (i32, i32) {
    %c0_i32 = arith.constant 0 : i32
    %c0_i32_0 = arith.constant 0 : i32
    %c0_i32_1 = arith.constant 0 : i32
    return %c0_i32, %c0_i32_0 : i32, i32
  }
  func.func @transform_7(%arg0: i32, %arg1: i32, %arg2: memref<2xi32, #tpu.memory_space<smem>>) -> (i32, i32) {
    %c0_i32 = arith.constant 0 : i32
    %c0_i32_0 = arith.constant 0 : i32
    %c0_i32_1 = arith.constant 0 : i32
    return %c0_i32, %c0_i32_0 : i32, i32
  }
  func.func @transform_8(%arg0: i32, %arg1: i32, %arg2: memref<2xi32, #tpu.memory_space<smem>>) -> (i32, i32) {
    %c0_i32 = arith.constant 0 : i32
    %c0_i32_0 = arith.constant 0 : i32
    %c0_i32_1 = arith.constant 0 : i32
    return %c0_i32, %c0_i32_0 : i32, i32
  }
  func.func @transform_9(%arg0: i32, %arg1: i32, %arg2: memref<2xi32, #tpu.memory_space<smem>>) -> (i32, i32) {
    %c0_i32 = arith.constant 0 : i32
    %c0_i32_0 = arith.constant 0 : i32
    %c0_i32_1 = arith.constant 0 : i32
    return %c0_i32, %c0_i32_0 : i32, i32
  }
  func.func @transform_10(%arg0: i32, %arg1: i32, %arg2: memref<2xi32, #tpu.memory_space<smem>>) -> (i32, i32) {
    %c0_i32 = arith.constant 0 : i32
    %c0_i32_0 = arith.constant 0 : i32
    %c0_i32_1 = arith.constant 0 : i32
    return %c0_i32, %c0_i32_0 : i32, i32
  }
  func.func @transform_11(%arg0: i32, %arg1: i32, %arg2: memref<2xi32, #tpu.memory_space<smem>>) -> (i32, i32) {
    %c0_i32 = arith.constant 0 : i32
    %c0_i32_0 = arith.constant 0 : i32
    %c0_i32_1 = arith.constant 0 : i32
    return %c0_i32, %c0_i32_0 : i32, i32
  }
  func.func @transform_12(%arg0: i32, %arg1: i32, %arg2: memref<2xi32, #tpu.memory_space<smem>>) -> (i32, i32, i32) {
    %c0_i32 = arith.constant 0 : i32
    %c0_i32_0 = arith.constant 0 : i32
    %c0_i32_1 = arith.constant 0 : i32
    return %arg0, %c0_i32, %c0_i32_0 : i32, i32, i32
  }
}

</mosaic_0001>

<bundles_post_ra>
// kernel: tpu_custom_call.1
= control target key start
LH: loop header
LB: loop body
LE: loop exit
PB: predicated region body
PF: predicated region fallthrough
CT: control target
= control target key end

     0   :  { %s1158_s0 = inlined_call_operand.vmem [shape: s32[2], index: 0, kind: input, shape index: {}]   ;;  %s1159_s1 = inlined_call_operand.vmem [shape: f32[2,16,128], index: 1, kind: input, shape index: {}]   ;;  %s1160_s2 = inlined_call_operand.vmem [shape: s32[1,128], index: 2, kind: input, shape index: {}]   ;;  %s1161_s3 = inlined_call_operand.vmem [shape: f32[128,8], index: 3, kind: input, shape index: {}]   ;;  %s1162_s4 = inlined_call_operand.vmem [shape: f32[1,8], index: 4, kind: input, shape index: {}]   ;;  %s1163_s5 = inlined_call_operand.vmem [shape: f32[1,8], index: 5, kind: input, shape index: {}]   ;;  %s1164_s6 = inlined_call_operand.vmem [shape: f32[1,8], index: 6, kind: input, shape index: {}]   ;;  %s1165_s7 = inlined_call_operand.vmem [shape: f32[8,2], index: 7, kind: input, shape index: {}]   ;;  %s1166_s8 = inlined_call_operand.vmem [shape: f32[1,2], index: 8, kind: input, shape index: {}]   ;;  %s1167_s9 = inlined_call_operand.vmem [shape: f32[1,2], index: 9, kind: input, shape index: {}]   ;;  %s1168_s10 = inlined_call_operand.vmem [shape: f32[1,2], index: 10, kind: input, shape index: {}]   ;;  %s1169_s11 = inlined_call_operand.vmem [shape: f32[1,2], index: 11, kind: input, shape index: {}]   ;;  %s1170_s13 = inlined_call_operand.vmem [shape: f32[2,1,1], index: 13, kind: output, shape index: {}]   ;;  %s1171_s12 = inlined_call_operand.<no memory space> [shape: f32[1,1], index: 12, kind: input, shape index: {}]  }
   0x1   :  { %s18_s27 = sshll.u32 %s1158_s0, 4  ;;  %v22_v0 = vstv %s1171_s12  ;;  %s19_s27 = int_to_ptr.vmem [resolvable:$true] %s18_s27 }
   0x2   :  { %23 = vst [vmem:[#allocation5] sm:$0x1] %v22_v0  ;;  %s916_s30 = scalar_lea.vmem %s19_s27, 16  ;;  %p921_p1 = scmp.lt.s32.totalorder %s19_s27, %s19_s27 }
   0x3   :  { %p917_p0 = scmp.ne.s32.totalorder %s19_s27, %s916_s30  ;;  %p922_p2 = scmp.lt.s32.totalorder %s916_s30, %s916_s30 }
   0x5   :  { %p923_p3 = por %p922_p2, %p921_p1 }
   0x7   :  { %p924_p4 = pnand %p923_p3, %p917_p0 }
   0x9   :  { %927 = shalt.err (!%p924_p4)  }
   0xa   :  { %s954_s14 = smov [#allocation4]  }
   0xb   :  { %21 = dma.vmem_to_smem %s19_s27, 16, %s954_s14, [#allocation3] }
   0xc   :  { %940 = dma.done.wait [#allocation3], 16 }
   0xd   :  { %941 = vsyncadd [#allocation3], 4294967280 }
   0xe   :  { %25 = sfence }
   0xf   :  { %s1034_s15 = smov 0   ;;  %s1036_s0 = smov 0  }
  0x10   :  { %s1038_s16 = smov 0  }
  0x11 LB: > { %s43_s12 = sadd.s32 1, %s948_s0  ;;  %p782_p5 = scmp.ge.s32.totalorder %s952_s16, 1  ;;  %s952_s16 = sphi %s1038_s16, %s31_s16   ;;  %s948_s0 = sphi %s1036_s0, %s1173_s0   ;;  %s944_s15 = sphi %s1034_s15, %s1172_s15  }
  0x12   : > { %p45_p6 = scmp.ge.s32.totalorder %s43_s12, 2  ;;  %p390_p7 = scmp.lt.s32.totalorder %s952_s16, 3 }
  0x14   : > { %s1175_s12 = smov (%p45_p6, %s43_s12), 0  ;;  %p391_p8 = pnand %p782_p5, %p390_p7 }
  0x15   : > { %p435_p9 = scmp.lt.s32.totalorder (!%p391_p8), %s944_s15, 1  ;;  %s452_s17 = sld [smem:[#allocation4 + %s944_s15]] (!%p391_p8)  ;;  %v493_v1 = vld [vmem:[%s1161_s3] sm:$0xff] (!%p391_p8)  ;;  %v457_v2 = vlaneseq (!%p391_p8)  ;;  %v955_v3 = vmov (!%p391_p8), 0.0|0.0   ;;  %v494_v4 = vld [vmem:[%s1161_s3 + $0x8] sm:$0xff] (!%p391_p8)  ;;  %v495_v5 = vld [vmem:[%s1161_s3 + $0x10] sm:$0xff] (!%p391_p8) }
  0x16   : > { %394 = sbr.rel (%p391_p8) target bundleno = 1356 (0x54c), region = 68  ;;  %848 = vmatprep.subr.bf16.mxu0 (!%p391_p8), %v955_v3  ;;  %v496_v6 = vld [vmem:[%s1161_s3 + $0x18] sm:$0xff] (!%p391_p8)  ;;  %v849_v7 = vpack.c.bf16 (!%p391_p8), %v494_v4, %v493_v1  ;;  %v956_v8 = vmov (!%p391_p8), 0.0   ;;  %vm957_vm0 = vmmov (!%p391_p8), 0   ;;  %v460_v9 = vld [vmem:[%s1160_s2] sm:$0x1] (!%p391_p8) }
  0x17   : > { %451 = vst [vmem:[#allocation2] sm:$0x1] (!%p391_p8), %v956_v8  ;;  %840 = vmatprep.mubr.msk.f32.mxu0 (!%p391_p8), %vm957_vm0, %v956_v8  ;;  %843 = vmatprep.subr.mxu1 (!%p391_p8), %v956_v8  ;;  %v852_v10 = vpack.c.bf16 (!%p391_p8), %v496_v6, %v495_v5  ;;  %v458_v11 = vshrl.u32 (!%p391_p8), %v457_v2, 7  ;;  %v497_v12 = vld [vmem:[%s1161_s3 + $0x20] sm:$0xff] (!%p391_p8)  ;;  %v498_v13 = vld [vmem:[%s1161_s3 + $0x28] sm:$0xff] (!%p391_p8)  ;;  %v499_v20 = vld [vmem:[%s1161_s3 + $0x30] sm:$0xff] (!%p391_p8) }
  0x18   : > { %845 = vmatprep.mubr.msk.f32.mxu1 (!%p391_p8), %vm957_vm0, %v956_v8  ;;  %850 = vmatpush3.bf16.msra.mxu0 (!%p391_p8), %v849_v7  ;;  %v855_v17 = vpack.c.bf16 (!%p391_p8), %v498_v13, %v497_v12  ;;  %v500_v21 = vld [vmem:[%s1161_s3 + $0x38] sm:$0xff] (!%p391_p8)  ;;  %v501_v25 = vld [vmem:[%s1161_s3 + $0x40] sm:$0xff] (!%p391_p8)  ;;  %v502_v29 = vld [vmem:[%s1161_s3 + $0x48] sm:$0xff] (!%p391_p8)  ;;  %vm589_vm3 = vcmask (!%p391_p8), 57344   ;;  %vm608_vm4 = vcmask (!%p391_p8), 64512   ;;  %vm691_vm5 = vcmask (!%p391_p8), 8192  }
  0x19   : > { %851 = vmatprep.subr.bf16.mxu0 (!%p391_p8), %v955_v3  ;;  %v467_v19 = vsub.s32 (!%p391_p8), 0, %v458_v11  ;;  %v459_v22 = vadd.s32 (!%p391_p8), 8, %v458_v11  ;;  %v858_v24 = vpack.c.bf16 (!%p391_p8), %v500_v21, %v499_v20  ;;  %v861_v32 = vpack.c.bf16 (!%p391_p8), %v502_v29, %v501_v25  ;;  %v503_v34 = vld [vmem:[%s1161_s3 + $0x50] sm:$0xff] (!%p391_p8)  ;;  %v504_v35 = vld [vmem:[%s1161_s3 + $0x58] sm:$0xff] (!%p391_p8)  ;;  %v505_v40 = vld [vmem:[%s1161_s3 + $0x60] sm:$0xff] (!%p391_p8) }
  0x1a   : > { %v864_v38 = vpack.c.bf16 (!%p391_p8), %v504_v35, %v503_v34  ;;  %v506_v41 = vld [vmem:[%s1161_s3 + $0x68] sm:$0xff] (!%p391_p8)  ;;  %v507_v45 = vld [vmem:[%s1161_s3 + $0x70] sm:$0xff] (!%p391_p8)  ;;  %v508_v46 = vld [vmem:[%s1161_s3 + $0x78] sm:$0xff] (!%p391_p8)  ;;  %vm715_vm6 = vcmask (!%p391_p8), 0  }
  0x1b   : > { %v461_v14 = vstv (!%p391_p8), %s452_s17  ;;  %s486_s18 = scvt.s32.f32 (!%p391_p8), %s452_s17  ;;  %v867_v43 = vpack.c.bf16 (!%p391_p8), %v506_v41, %v505_v40  ;;  %v870_v49 = vpack.c.bf16 (!%p391_p8), %v508_v46, %v507_v45  ;;  %v509_v55 = vld [vmem:[%s1162_s4] sm:$0x1] (!%p391_p8)  ;;  %v713_v45 = vld [vmem:[#allocation5] sm:$0x1] (!%p391_p8) }
  0x1c   : > { %v462_v15 = vsub.s32 (!%p391_p8), %v461_v14, %v460_v9  ;;  %853 = vmatpush3.bf16.msra.mxu0 (!%p391_p8), %v852_v10  ;;  %v606_v7 = vld [vmem:[%s1165_s7] sm:$0xff] (!%p391_p8) }
  0x1d   : > { %s1177_s15 = smov (!%p435_p9, %s944_s15), 1  ;;  %v487_v16 = vstv %s486_s18  ;;  %854 = vmatprep.subr.bf16.mxu0 %v955_v3  ;;  %844 = vmatpush3.msra.mxu1 %v606_v7  ;;  %v587_v12 = vld [vmem:[%s1163_s5] sm:$0x1] }
  0x1e   : > { %s788_s19 = sshll.u32 %s1177_s15, 4  ;;  %v463_v18 = vadd.s32 3, %v462_v15  ;;  %902 = vrcp.f32 %v487_v16  ;;  %v473_v48 = vld [vmem:[#allocation2] sm:$0x1]  ;;  %s446_s14 = scalar_lea.vmem %s1170_s13, %s1177_s15 }
  0x1f   : > { %s442_s25 = scalar_lea.vmem %s1159_s1, %s788_s19  ;;  %v588_v14 = vld [vmem:[%s1164_s6] sm:$0x1] }
  0x20   : > { %v464_v23 = vshra.s32 %v463_v18, 2  ;;  %856 = vmatpush3.bf16.msra.mxu0 %v855_v17  ;;  %v455_v26 = vld [vmem:[%s442_s25] sm:$0xff]  ;;  %v456_v27 = vld [vmem:[%s442_s25 + $0x8] sm:$0xff] }
  0x21   : > { %857 = vmatprep.subr.bf16.mxu0 %v955_v3  ;;  %v607_v17 = vld [vmem:[%s1166_s8] sm:$0x1] }
  0x22   : > { %v468_v28 = vrot.slane %v464_v23, %v467_v19  ;;  %v708_v41 = vld [vmem:[%s1169_s11] sm:$0x1] }
  0x24   : > { %vm469_vm1 = vcmp.lt.s32.totalorder %v458_v11, %v468_v28  ;;  %vm470_vm2 = vcmp.lt.s32.totalorder %v459_v22, %v468_v28  ;;  %859 = vmatpush3.bf16.msra.mxu0 %v858_v24 }
  0x25   : > { %v471_v30 = vsel %vm469_vm1, %v455_v26, 0.0  ;;  %v472_v31 = vsel %vm470_vm2, %v456_v27, 0.0  ;;  %860 = vmatprep.subr.bf16.mxu0 %v955_v3 }
  0x26   : > { %v474_v33 = vadd.f32 %v472_v31, %v471_v30 }
  0x28   : > { %v903_v36 = vpop.eup %902  ;;  %v475_v37 = vrot.slane %v474_v33, 4  ;;  %862 = vmatpush3.bf16.msra.mxu0 %v861_v32 }
  0x29   : > { %872 = vpush %v903_v36  ;;  %863 = vmatprep.subr.bf16.mxu0 %v955_v3 }
  0x2a   : > { %v476_v39 = vadd.f32 %v475_v37, %v474_v33  ;;  %v689_v37 = vld [vmem:[%s1167_s9] sm:$0x1] }
  0x2c   : > { %v477_v42 = vrot.slane %v476_v39, 2  ;;  %865 = vmatpush3.bf16.msra.mxu0 %v864_v38 }
  0x2d   : > { %866 = vmatprep.subr.bf16.mxu0 %v955_v3 }
  0x2e   : > { %v478_v44 = vadd.f32 %v477_v42, %v476_v39  ;;  %v690_v39 = vld [vmem:[%s1168_s10] sm:$0x1] }
  0x30   : > { %v479_v47 = vrot.slane %v478_v44, 1  ;;  %868 = vmatpush3.bf16.msra.mxu0 %v867_v43 }
  0x31   : > { %869 = vmatprep.subr.bf16.mxu0 %v955_v3 }
  0x32   : > { %v480_v50 = vadd.f32 %v479_v47, %v478_v44 }
  0x34   : > { %v481_v51 = vadd.f32 %v480_v50, %v473_v48  ;;  %871 = vmatpush3.bf16.msra.mxu0 %v870_v49 }
  0x36   : > { %482 = vst [vmem:[#allocation2] sm:$0x1] %v481_v51 }
  0x3d   : > { %v490_v52 = vld [vmem:[#allocation2] sm:$0x1] }
  0x5a   : > { %s873_s27 = spop %872 }
  0x5b   : > { %v491_v53 = vstv %s873_s27 }
  0x5c   : > { %v492_v54 = vmul.f32 %v491_v53, %v490_v52 }
  0x5e   : > { %841 = vmatmul.mubr.f32.vlgmr.msra.gmra.mrb[0].mxu0 %v492_v54 }
 0x131   : > { %v576_v56 = vpop.f32.mrb[0].mxu0 }
 0x132   : > { %v577_v57 = vadd.f32 %v576_v56, %v509_v55  ;;  %v842_v58 = vpop.f32.mrb[1].mxu0 }
 0x134   : > { %v580_v59 = vsub.f32 0.0, %v577_v57 }
 0x136   : > { %v581_v60 = vmul.f32 1.442695, %v580_v59 }
 0x138   : > { %904 = vpow2.f32 %v581_v60 }
 0x142   : > { %v905_v61 = vpop.eup %904 }
 0x143   : > { %v583_v62 = vadd.f32 1.0, %v905_v61 }
 0x145   : > { %906 = vrcp.f32 %v583_v62 }
 0x14f   : > { %v907_v63 = vpop.eup %906 }
 0x150   : > { %v586_v0 = vmul.f32 %v907_v63, %v577_v57 }
 0x152   : > { %v590_v1 = vsel %vm589_vm3, %v586_v0, 0.0 }
 0x153   : > { %591 = vadd.xlane.f32.xlu0 %v590_v1 }
 0x1e0   : > { %v592_v2 = vpop.xlane.xlu0 %591 }
 0x1e1   : > { %v594_v3 = vmul.f32 0.125, %v592_v2 }
 0x1e3   : > { %v595_v4 = vsub.f32 %v586_v0, %v594_v3 }
 0x1e5   : > { %v596_v5 = vmul.f32 %v595_v4, %v595_v4 }
 0x1e7   : > { %v597_v6 = vsel %vm589_vm3, %v596_v5, 0.0 }
 0x1e8   : > { %598 = vadd.xlane.f32.xlu0 %v597_v6 }
 0x275   : > { %v599_v8 = vpop.xlane.xlu0 %598 }
 0x276   : > { %v600_v9 = vmul.f32 0.125, %v599_v8 }
 0x278   : > { %v601_v10 = vadd.f32 1e-05, %v600_v9 }
 0x27a   : > { %908 = vrsqrt.f32 %v601_v10 }
 0x284   : > { %v909_v11 = vpop.eup %908 }
 0x285   : > { %v603_v13 = vmul.f32 %v909_v11, %v595_v4 }
 0x287   : > { %v604_v15 = vmul.f32 %v603_v13, %v587_v12 }
 0x289   : > { %v605_v16 = vadd.f32 %v604_v15, %v588_v14 }
 0x28b   : > { %846 = vmatmul.mubr.msk.f32.vlgmr.msra.gmra.mrb[0].mxu1 %vm608_vm4, %v605_v16 }
 0x35e   : > { %v678_v18 = vpop.f32.mrb[0].mxu1 }
 0x35f   : > { %v679_v19 = vadd.f32 %v678_v18, %v607_v17  ;;  %v847_v20 = vpop.f32.mrb[1].mxu1 }
 0x361   : > { %v682_v21 = vsub.f32 0.0, %v679_v19 }
 0x363   : > { %v683_v22 = vmul.f32 1.442695, %v682_v21 }
 0x365   : > { %910 = vpow2.f32 %v683_v22 }
 0x36f   : > { %v911_v23 = vpop.eup %910 }
 0x370   : > { %v685_v24 = vadd.f32 1.0, %v911_v23 }
 0x372   : > { %912 = vrcp.f32 %v685_v24 }
 0x37c   : > { %v913_v25 = vpop.eup %912 }
 0x37d   : > { %v688_v26 = vmul.f32 %v913_v25, %v679_v19 }
 0x37f   : > { %v692_v27 = vsel %vm691_vm5, %v688_v26, 0.0 }
 0x380   : > { %693 = vadd.xlane.f32.xlu1 %v692_v27 }
 0x40d   : > { %v694_v28 = vpop.xlane.xlu1 %693 }
 0x40e   : > { %v696_v29 = vmul.f32 0.5, %v694_v28 }
 0x410   : > { %v697_v30 = vsub.f32 %v688_v26, %v696_v29 }
 0x412   : > { %v698_v31 = vmul.f32 %v697_v30, %v697_v30 }
 0x414   : > { %v699_v32 = vsel %vm691_vm5, %v698_v31, 0.0 }
 0x415   : > { %700 = vadd.xlane.f32.xlu1 %v699_v32 }
 0x4a2   : > { %v701_v33 = vpop.xlane.xlu1 %700 }
 0x4a3   : > { %v702_v34 = vmul.f32 0.5, %v701_v33 }
 0x4a5   : > { %v703_v35 = vadd.f32 1e-05, %v702_v34 }
 0x4a7   : > { %914 = vrsqrt.f32 %v703_v35 }
 0x4b1   : > { %v915_v36 = vpop.eup %914 }
 0x4b2   : > { %v705_v38 = vmul.f32 %v915_v36, %v697_v30 }
 0x4b4   : > { %v706_v40 = vmul.f32 %v705_v38, %v689_v37 }
 0x4b6   : > { %v707_v42 = vadd.f32 %v706_v40, %v690_v39 }
 0x4b8   : > { %v709_v43 = vmul.f32 %v708_v41, %v707_v42 }
 0x4ba   : > { %v710_v44 = vsel %vm691_vm5, %v709_v43, 0.0 }
 0x4bb   : > { %711 = vadd.xlane.f32.xlu0 %v710_v44 }
 0x548   : > { %v712_v46 = vpop.xlane.xlu0 %711 }
 0x549   : > { %v714_v47 = vadd.f32 %v713_v45, %v712_v46 }
 0x54b   : > { %716 = vst.msk [vmem:[%s446_s14] sm:$0x1] %vm715_vm6, %v714_v47 }
 0x54c PF: > { %s31_s16 = sadd.s32 1, %s952_s16   ;;  %s1172_s15 = smov %s948_s0 }
 0x54d   : > { %p28_p10 = scmp.ge.s32.totalorder %s31_s16, 4   ;;  %s1173_s0 = smov %s1175_s12 }
 0x54f   :  { %30 = sbr.rel (!%p28_p10) target bundleno = 17 (0x11), region = 106 }

</bundles_post_ra>
